<compile_context>
chip_gen: v5e
topology: v5e:2x2
jax: 0.10.0
libtpu: 0.0.40
codegen_flags: <defaults>
</compile_context>

<pallas_src>
import functools

import jax
import jax.numpy as jnp
from jax.experimental import pallas as pl
from jax.experimental.pallas import tpu as pltpu


def _round_up(x, m):
    return ((x + m - 1) // m) * m


# ---------------------------------------------------------------------------
# Kernel
# ---------------------------------------------------------------------------
def _mlp_kernel(x_ref, p_ref, o_ref, *, n_layer, width):
    """Fused MLP forward on one batch tile.

    x_ref : (TILE_B, width)      zero-padded activations (features in cols [0, n_feature))
    p_ref : (4*width + 8, width) packed, zero-padded weights + biases:
              rows [0*width, 1*width) : w1   (n_feature x n_neuron1 in top-left)
              rows [1*width, 2*width) : w2
              rows [2*width, 3*width) : w3   (shared "hidden2")
              rows [3*width, 4*width) : w4
              row   4*width + 0..3    : b1, b2, b3, b4 (each 1 x width, zero-padded)
    o_ref : (TILE_B, width)      lane-dense output; real result in cols [0, n_output)
    """
    x = x_ref[...]

    # Load every weight / bias exactly once (hoisted out of the unrolled loop).
    w1 = p_ref[0 * width:1 * width, :]
    w2 = p_ref[1 * width:2 * width, :]
    w3 = p_ref[2 * width:3 * width, :]
    w4 = p_ref[3 * width:4 * width, :]
    b_off = 4 * width
    b1 = p_ref[b_off + 0:b_off + 1, :]
    b2 = p_ref[b_off + 1:b_off + 2, :]
    b3 = p_ref[b_off + 2:b_off + 3, :]
    b4 = p_ref[b_off + 3:b_off + 4, :]

    # input_layer + ReLU
    out = jnp.maximum(
        jnp.dot(x, w1, preferred_element_type=jnp.float32) + b1, 0.0)
    # hidden1 + ReLU
    out = jnp.maximum(
        jnp.dot(out, w2, preferred_element_type=jnp.float32) + b2, 0.0)
    # hidden2 applied n_layer times (shared weights), each followed by ReLU.
    # n_layer is a static Python int -> unrolled at trace time; w3/b3 already
    # resident in vregs, so each iteration is just dot + add + max.
    for _ in range(n_layer):
        out = jnp.maximum(
            jnp.dot(out, w3, preferred_element_type=jnp.float32) + b3, 0.0)
    # predict (no activation); lane-dense store.
    o_ref[...] = (
        jnp.dot(out, w4, preferred_element_type=jnp.float32) + b4
    ).astype(o_ref.dtype)


# ---------------------------------------------------------------------------
# Host-side wrapper
# ---------------------------------------------------------------------------
def _pack_params(params, width):
    """Pack all weights/biases into one (4*width + 8, width) zero-padded buffer."""
    w1, b1, w2, b2, w3, b3, w4, b4 = params

    def pad_w(w):
        r, c = w.shape
        return jnp.pad(w.astype(jnp.float32), ((0, width - r), (0, width - c)))

    def pad_b(b):
        return jnp.pad(b.astype(jnp.float32), ((0, 0), (0, width - b.shape[1])))

    return jnp.concatenate(
        [
            pad_w(w1), pad_w(w2), pad_w(w3), pad_w(w4),
            pad_b(b1), pad_b(b2), pad_b(b3), pad_b(b4),
            jnp.zeros((4, width), jnp.float32),   # pad bias block to 8 sublanes
        ],
        axis=0,
    )


def net_forward(x, params, n_layer):
    """Forward pass of `Net` via a single fused Pallas kernel."""
    w1, b1, w2, b2, w3, b3, w4, b4 = params
    n_feature = w1.shape[0]
    n_output = w4.shape[1]

    # Common padded lane width for all layers (>= every layer dim, multiple of 128).
    width = _round_up(max(n_feature, w1.shape[1], w2.shape[1], n_output, 1), 128)

    batch = x.shape[0]
    tile_b = min(_round_up(batch, 8), 256)        # f32 sublane multiple
    batch_pad = _round_up(batch, tile_b)

    # Zero-pad activations to (batch_pad, width); zero cols/rows are inert.
    x_p = jnp.zeros((batch_pad, width), jnp.float32)
    x_p = x_p.at[:batch, :n_feature].set(x.astype(jnp.float32))

    packed = _pack_params(params, width)          # (4*width + 8, width)
    packed_rows = packed.shape[0]

    kernel = functools.partial(_mlp_kernel, n_layer=n_layer, width=width)

    out_p = pl.pallas_call(
        kernel,
        out_shape=jax.ShapeDtypeStruct((batch_pad, width), jnp.float32),
        grid=(batch_pad // tile_b,),
        in_specs=[
            pl.BlockSpec((tile_b, width), lambda i: (i, 0)),
            # Constant block index -> weights DMA'd once, kept resident in VMEM.
            pl.BlockSpec((packed_rows, width), lambda i: (0, 0)),
        ],
        out_specs=pl.BlockSpec((tile_b, width), lambda i: (i, 0)),
        compiler_params=pltpu.CompilerParams(
            dimension_semantics=("parallel",)),
    )(x_p, packed)

    # Slice back to the PyTorch output contract.
    return out_p[:batch, :n_output]


# ---------------------------------------------------------------------------
# Init + pure-JAX reference
# ---------------------------------------------------------------------------
def init_params(key, n_feature, n_output, n_neuron1, n_neuron2):
    """Deterministic init mimicking torch.nn.Linear (U(-1/sqrt(fan_in), 1/sqrt(fan_in)))."""
    def linear(key, fan_in, fan_out):
        kw, kb = jax.random.split(key)
        bound = 1.0 / jnp.sqrt(jnp.float32(fan_in))
        w = jax.random.uniform(kw, (fan_in, fan_out), jnp.float32, -bound, bound)
        b = jax.random.uniform(kb, (1, fan_out), jnp.float32, -bound, bound)
        return w, b

    k1, k2, k3, k4 = jax.random.split(key, 4)
    w1, b1 = linear(k1, n_feature, n_neuron1)   # input_layer
    w2, b2 = linear(k2, n_neuron1, n_neuron2)   # hidden1
    w3, b3 = linear(k3, n_neuron2, n_neuron2)   # hidden2 (shared across n_layer)
    w4, b4 = linear(k4, n_neuron2, n_output)    # predict
    return (w1, b1, w2, b2, w3, b3, w4, b4)


def reference_forward(x, params, n_layer):
    """Pure-JAX reference for correctness checking."""
    w1, b1, w2, b2, w3, b3, w4, b4 = params
    out = jnp.maximum(x @ w1 + b1, 0.0)
    out = jnp.maximum(out @ w2 + b2, 0.0)
    for _ in range(n_layer):
        out = jnp.maximum(out @ w3 + b3, 0.0)
    return out @ w4 + b4


if __name__ == "__main__":
    # Boston housing: 13 features, 1 output (house price). Small synthetic batch.
    n_feature, n_output = 13, 1
    n_neuron1, n_neuron2 = 32, 32
    n_layer = 2
    batch = 8

    key = jax.random.PRNGKey(0)
    kx, kp = jax.random.split(key)
    x = jax.random.normal(kx, (batch, n_feature), dtype=jnp.float32)
    params = init_params(kp, n_feature, n_output, n_neuron1, n_neuron2)

    out = net_forward(x, params, n_layer)
    out = jax.block_until_ready(out)

    ref = reference_forward(x, params, n_layer)
    assert out.shape == (batch, n_output), out.shape
    assert jnp.allclose(out, ref, atol=1e-4, rtol=1e-4), "mismatch vs JAX reference"

    print("KERNEL_OK")
</pallas_src>

<mosaic_0001>
module attributes {stable_mosaic.version = 11 : i64} {
  func.func @_mlp_kernel(%arg0: i32, %arg1: memref<8x128xf32, #tpu.memory_space<vmem>>, %arg2: memref<520x128xf32, #tpu.memory_space<vmem>>, %arg3: memref<8x128xf32, #tpu.memory_space<vmem>>) attributes {dimension_semantics = [#tpu.dimension_semantics<parallel>], iteration_bounds = array<i64: 1>, scalar_prefetch = 0 : i64, scratch_operands = 0 : i64, tpu.core_type = #tpu.core_type<tc>, window_params = [{transform_indices = @transform_0, window_bounds = array<i64: 8, 128>}, {pipeline_mode = #tpu.pipeline_mode<synchronous>, transform_indices = @transform_1, window_bounds = array<i64: 520, 128>}, {transform_indices = @transform_2, window_bounds = array<i64: 8, 128>}]} {
    %c0 = arith.constant 0 : index
    %c0_0 = arith.constant 0 : index
    %0 = vector.load %arg1[%c0, %c0_0] : memref<8x128xf32, #tpu.memory_space<vmem>>, vector<8x128xf32>
    %c0_1 = arith.constant 0 : index
    %c0_2 = arith.constant 0 : index
    %1 = vector.load %arg2[%c0_1, %c0_2] : memref<520x128xf32, #tpu.memory_space<vmem>>, vector<128x128xf32>
    %c128 = arith.constant 128 : index
    %c0_3 = arith.constant 0 : index
    %2 = vector.load %arg2[%c128, %c0_3] : memref<520x128xf32, #tpu.memory_space<vmem>>, vector<128x128xf32>
    %c256 = arith.constant 256 : index
    %c0_4 = arith.constant 0 : index
    %3 = vector.load %arg2[%c256, %c0_4] : memref<520x128xf32, #tpu.memory_space<vmem>>, vector<128x128xf32>
    %c384 = arith.constant 384 : index
    %c0_5 = arith.constant 0 : index
    %4 = vector.load %arg2[%c384, %c0_5] : memref<520x128xf32, #tpu.memory_space<vmem>>, vector<128x128xf32>
    %c512 = arith.constant 512 : index
    %c0_6 = arith.constant 0 : index
    %5 = vector.load %arg2[%c512, %c0_6] : memref<520x128xf32, #tpu.memory_space<vmem>>, vector<1x128xf32>
    %c513 = arith.constant 513 : index
    %c0_7 = arith.constant 0 : index
    %6 = vector.load %arg2[%c513, %c0_7] : memref<520x128xf32, #tpu.memory_space<vmem>>, vector<1x128xf32>
    %c514 = arith.constant 514 : index
    %c0_8 = arith.constant 0 : index
    %7 = vector.load %arg2[%c514, %c0_8] : memref<520x128xf32, #tpu.memory_space<vmem>>, vector<1x128xf32>
    %c515 = arith.constant 515 : index
    %c0_9 = arith.constant 0 : index
    %8 = vector.load %arg2[%c515, %c0_9] : memref<520x128xf32, #tpu.memory_space<vmem>>, vector<1x128xf32>
    %cst = arith.constant dense<0.000000e+00> : vector<8x128xf32>
    %9 = tpu.matmul %0, %1, %cst {dimension_numbers = #tpu.dot_dimension_numbers<[1], [0], [0], [1], [0, 0, 1, 1], [], []>} : vector<8x128xf32>, vector<128x128xf32>, vector<8x128xf32> -> vector<8x128xf32>
    %10 = vector.broadcast %5 : vector<1x128xf32> to vector<8x128xf32>
    %11 = arith.addf %9, %10 : vector<8x128xf32>
    %cst_10 = arith.constant 0.000000e+00 : f32
    %12 = vector.broadcast %cst_10 : f32 to vector<8x128xf32>
    %13 = arith.maximumf %11, %12 : vector<8x128xf32>
    %cst_11 = arith.constant dense<0.000000e+00> : vector<8x128xf32>
    %14 = tpu.matmul %13, %2, %cst_11 {dimension_numbers = #tpu.dot_dimension_numbers<[1], [0], [0], [1], [0, 0, 1, 1], [], []>} : vector<8x128xf32>, vector<128x128xf32>, vector<8x128xf32> -> vector<8x128xf32>
    %15 = vector.broadcast %6 : vector<1x128xf32> to vector<8x128xf32>
    %16 = arith.addf %14, %15 : vector<8x128xf32>
    %cst_12 = arith.constant 0.000000e+00 : f32
    %17 = vector.broadcast %cst_12 : f32 to vector<8x128xf32>
    %18 = arith.maximumf %16, %17 : vector<8x128xf32>
    %cst_13 = arith.constant dense<0.000000e+00> : vector<8x128xf32>
    %19 = tpu.matmul %18, %3, %cst_13 {dimension_numbers = #tpu.dot_dimension_numbers<[1], [0], [0], [1], [0, 0, 1, 1], [], []>} : vector<8x128xf32>, vector<128x128xf32>, vector<8x128xf32> -> vector<8x128xf32>
    %20 = vector.broadcast %7 : vector<1x128xf32> to vector<8x128xf32>
    %21 = arith.addf %19, %20 : vector<8x128xf32>
    %cst_14 = arith.constant 0.000000e+00 : f32
    %22 = vector.broadcast %cst_14 : f32 to vector<8x128xf32>
    %23 = arith.maximumf %21, %22 : vector<8x128xf32>
    %cst_15 = arith.constant dense<0.000000e+00> : vector<8x128xf32>
    %24 = tpu.matmul %23, %3, %cst_15 {dimension_numbers = #tpu.dot_dimension_numbers<[1], [0], [0], [1], [0, 0, 1, 1], [], []>} : vector<8x128xf32>, vector<128x128xf32>, vector<8x128xf32> -> vector<8x128xf32>
    %25 = vector.broadcast %7 : vector<1x128xf32> to vector<8x128xf32>
    %26 = arith.addf %24, %25 : vector<8x128xf32>
    %cst_16 = arith.constant 0.000000e+00 : f32
    %27 = vector.broadcast %cst_16 : f32 to vector<8x128xf32>
    %28 = arith.maximumf %26, %27 : vector<8x128xf32>
    %cst_17 = arith.constant dense<0.000000e+00> : vector<8x128xf32>
    %29 = tpu.matmul %28, %4, %cst_17 {dimension_numbers = #tpu.dot_dimension_numbers<[1], [0], [0], [1], [0, 0, 1, 1], [], []>} : vector<8x128xf32>, vector<128x128xf32>, vector<8x128xf32> -> vector<8x128xf32>
    %30 = vector.broadcast %8 : vector<1x128xf32> to vector<8x128xf32>
    %31 = arith.addf %29, %30 : vector<8x128xf32>
    %c0_18 = arith.constant 0 : index
    %c0_19 = arith.constant 0 : index
    %32 = vector.load %arg3[%c0_18, %c0_19] : memref<8x128xf32, #tpu.memory_space<vmem>>, vector<8x128xf32>
    tpu.vector_store %arg3[%c0_18, %c0_19], %31 {strides = array<i32>} : memref<8x128xf32, #tpu.memory_space<vmem>>, vector<8x128xf32>,
    return
  }
  func.func @transform_0(%arg0: i32) -> (i32, i32) {
    %c0_i32 = arith.constant 0 : i32
    %c0_i32_0 = arith.constant 0 : i32
    return %arg0, %c0_i32 : i32, i32
  }
  func.func @transform_1(%arg0: i32) -> (i32, i32) {
    %c0_i32 = arith.constant 0 : i32
    %c0_i32_0 = arith.constant 0 : i32
    %c0_i32_1 = arith.constant 0 : i32
    return %c0_i32, %c0_i32_0 : i32, i32
  }
  func.func @transform_2(%arg0: i32) -> (i32, i32) {
    %c0_i32 = arith.constant 0 : i32
    %c0_i32_0 = arith.constant 0 : i32
    return %arg0, %c0_i32 : i32, i32
  }
}

</mosaic_0001>

<bundles_post_ra>
// kernel: tpu_custom_call.1
= control target key start
LH: loop header
LB: loop body
LE: loop exit
PB: predicated region body
PF: predicated region fallthrough
CT: control target
= control target key end

     0   :  { %7 = vsyncpa [#allocation3], 0  ;;  %s354_s0 = inlined_call_operand.hbm [shape: f32[8,128], index: 0, kind: input, shape index: {}]   ;;  %s355_s1 = inlined_call_operand.hbm [shape: f32[520,128], index: 1, kind: input, shape index: {}]   ;;  %s356_s2 = inlined_call_operand.hbm [shape: f32[8,128], index: 2, kind: output, shape index: {}]  }
   0x1   :  { %8 = vsyncpa [#allocation6], 0 }
   0x2   :  { %9 = vsyncpa [#allocation4], 0  ;;  %s15_s11 = sshll.u32 %s354_s0, 4  ;;  %s325_s12 = smov [#allocation2]   ;;  %s16_s11 = int_to_ptr.hbm [resolvable:$true] %s15_s11 }
   0x3   :  { %s17_s13 = sshll.u32 %s325_s12, 4  ;;  %s25_s16 = sshll.u32 %s355_s1, 4  ;;  %s18_s13 = int_to_ptr.vmem [resolvable:$true] %s17_s13  ;;  %s26_s16 = int_to_ptr.hbm [resolvable:$true] %s25_s16 }
   0x4   :  { %20 = dma.hbm_to_vmem [thread:$0]  %s16_s11, 128, %s18_s13, [#allocation3]  }
   0x5   :  { %s326_s17 = smov [#allocation5]   ;;  %s327_s19 = smov 128  }
   0x6   :  { %s27_s18 = sshll.u32 %s326_s17, 4  ;;  %s328_s20 = smov 8   ;;  %s28_s18 = int_to_ptr.vmem [resolvable:$true] %s27_s18 }
   0x7   :  { %33 = dma.hbm_to_vmem [thread:$0]  %s26_s16, 8320, %s28_s18, [#allocation6], %s327_s19, %s327_s19, %s328_s20  }
   0x8   :  { %319 = dma.done.wait [#allocation3], 128  }
   0x9   :  { %320 = vsyncadd [#allocation3], 4294967168 }
   0xa   :  { %321 = dma.done.wait [#allocation6], 8320  }
   0xb   :  { %322 = vsyncadd [#allocation6], 4294958976  ;;  %v58_v0 = vld [vmem:[#allocation5 + $0x78] sm:$0xff]  ;;  %v57_v1 = vld [vmem:[#allocation5 + $0x70] sm:$0xff]  ;;  %s329_s0 = smov [#allocation7]   ;;  %s227_s23 = sshll.u32 %s356_s2, 4  ;;  %s228_s23 = int_to_ptr.hbm [resolvable:$true] %s227_s23 }
   0xc   :  { %112 = vmatpush.msra.mxu0 %v58_v0  ;;  %v56_v2 = vld [vmem:[#allocation5 + $0x68] sm:$0xff]  ;;  %v55_v3 = vld [vmem:[#allocation5 + $0x60] sm:$0xff]  ;;  %v74_v4 = vld [vmem:[#allocation5 + $0xf8] sm:$0xff]  ;;  %s225_s1 = sshll.u32 %s329_s0, 4  ;;  %s226_s1 = int_to_ptr.vmem [resolvable:$true] %s225_s1 }
   0xd   :  { %v54_v5 = vld [vmem:[#allocation5 + $0x58] sm:$0xff]  ;;  %134 = vmatpush.msra.mxu1 %v74_v4  ;;  %v73_v6 = vld [vmem:[#allocation5 + $0xf0] sm:$0xff]  ;;  %v72_v7 = vld [vmem:[#allocation5 + $0xe8] sm:$0xff] }
   0xe   :  { %113 = vmatpush.msra.mxu0 %v57_v1  ;;  %v53_v8 = vld [vmem:[#allocation5 + $0x50] sm:$0xff]  ;;  %v71_v9 = vld [vmem:[#allocation5 + $0xe0] sm:$0xff]  ;;  %v52_v10 = vld [vmem:[#allocation5 + $0x48] sm:$0xff] }
   0xf   :  { %135 = vmatpush.msra.mxu1 %v73_v6  ;;  %v70_v11 = vld [vmem:[#allocation5 + $0xd8] sm:$0xff]  ;;  %v51_v12 = vld [vmem:[#allocation5 + $0x40] sm:$0xff]  ;;  %v69_v13 = vld [vmem:[#allocation5 + $0xd0] sm:$0xff] }
  0x10   :  { %114 = vmatpush.msra.mxu0 %v56_v2  ;;  %v50_v14 = vld [vmem:[#allocation5 + $0x38] sm:$0xff]  ;;  %v68_v15 = vld [vmem:[#allocation5 + $0xc8] sm:$0xff]  ;;  %v49_v16 = vld [vmem:[#allocation5 + $0x30] sm:$0xff] }
  0x11   :  { %136 = vmatpush.msra.mxu1 %v72_v7  ;;  %v67_v17 = vld [vmem:[#allocation5 + $0xc0] sm:$0xff]  ;;  %v48_v18 = vld [vmem:[#allocation5 + $0x28] sm:$0xff]  ;;  %v66_v19 = vld [vmem:[#allocation5 + $0xb8] sm:$0xff] }
  0x12   :  { %115 = vmatpush.msra.mxu0 %v55_v3  ;;  %v47_v20 = vld [vmem:[#allocation5 + $0x20] sm:$0xff]  ;;  %v65_v21 = vld [vmem:[#allocation5 + $0xb0] sm:$0xff]  ;;  %v46_v22 = vld [vmem:[#allocation5 + $0x18] sm:$0xff] }
  0x13   :  { %137 = vmatpush.msra.mxu1 %v71_v9  ;;  %v64_v23 = vld [vmem:[#allocation5 + $0xa8] sm:$0xff]  ;;  %v45_v24 = vld [vmem:[#allocation5 + $0x10] sm:$0xff]  ;;  %v63_v25 = vld [vmem:[#allocation5 + $0xa0] sm:$0xff] }
  0x14   :  { %116 = vmatpush.msra.mxu0 %v54_v5  ;;  %v44_v26 = vld [vmem:[#allocation5 + $0x8] sm:$0xff]  ;;  %v62_v27 = vld [vmem:[#allocation5 + $0x98] sm:$0xff]  ;;  %v43_v28 = vld [vmem:[#allocation5] sm:$0xff] }
  0x15   :  { %138 = vmatpush.msra.mxu1 %v70_v11  ;;  %v42_v29 = vld [vmem:[#allocation2] sm:$0xff]  ;;  %v61_v30 = vld [vmem:[#allocation5 + $0x90] sm:$0xff]  ;;  %v60_v31 = vld [vmem:[#allocation5 + $0x88] sm:$0xff] }
  0x16   :  { %117 = vmatpush.msra.mxu0 %v53_v8  ;;  %v59_v32 = vld [vmem:[#allocation5 + $0x80] sm:$0xff]  ;;  %v90_v33 = vld [vmem:[#allocation5 + $0x178] sm:$0xff]  ;;  %v89_v34 = vld [vmem:[#allocation5 + $0x170] sm:$0xff] }
  0x17   :  { %139 = vmatpush.msra.mxu1 %v69_v13  ;;  %156 = vmatpush.msra.mxu2 %v90_v33  ;;  %v88_v35 = vld [vmem:[#allocation5 + $0x168] sm:$0xff]  ;;  %v87_v36 = vld [vmem:[#allocation5 + $0x160] sm:$0xff]  ;;  %v86_v37 = vld [vmem:[#allocation5 + $0x158] sm:$0xff] }
  0x18   :  { %118 = vmatpush.msra.mxu0 %v52_v10  ;;  %177 = vmatpush.msra.mxu3 %v90_v33  ;;  %v85_v38 = vld [vmem:[#allocation5 + $0x150] sm:$0xff]  ;;  %v84_v39 = vld [vmem:[#allocation5 + $0x148] sm:$0xff]  ;;  %v83_v40 = vld [vmem:[#allocation5 + $0x140] sm:$0xff] }
  0x19   :  { %140 = vmatpush.msra.mxu1 %v68_v15  ;;  %157 = vmatpush.msra.mxu2 %v89_v34  ;;  %v82_v41 = vld [vmem:[#allocation5 + $0x138] sm:$0xff]  ;;  %v81_v42 = vld [vmem:[#allocation5 + $0x130] sm:$0xff]  ;;  %v80_v43 = vld [vmem:[#allocation5 + $0x128] sm:$0xff] }
  0x1a   :  { %119 = vmatpush.msra.mxu0 %v51_v12  ;;  %178 = vmatpush.msra.mxu3 %v89_v34  ;;  %v79_v44 = vld [vmem:[#allocation5 + $0x120] sm:$0xff]  ;;  %v78_v45 = vld [vmem:[#allocation5 + $0x118] sm:$0xff]  ;;  %v77_v50 = vld [vmem:[#allocation5 + $0x110] sm:$0xff] }
  0x1b   :  { %141 = vmatpush.msra.mxu1 %v67_v17  ;;  %158 = vmatpush.msra.mxu2 %v88_v35  ;;  %v243_v46 = vld [vmem:[#allocation5 + $0x200] ss:$0 sm:$0xff]  ;;  %v76_v51 = vld [vmem:[#allocation5 + $0x108] sm:$0xff]  ;;  %v244_v53 = vld [vmem:[#allocation5 + $0x201] ss:$0 sm:$0xff] }
  0x1c   :  { %120 = vmatpush.msra.mxu0 %v50_v14  ;;  %179 = vmatpush.msra.mxu3 %v88_v35  ;;  %v75_v52 = vld [vmem:[#allocation5 + $0x100] sm:$0xff]  ;;  %v106_v57 = vld [vmem:[#allocation5 + $0x1f8] sm:$0xff]  ;;  %v105_v58 = vld [vmem:[#allocation5 + $0x1f0] sm:$0xff] }
  0x1d   :  { %142 = vmatpush.msra.mxu1 %v66_v19  ;;  %159 = vmatpush.msra.mxu2 %v87_v36  ;;  %v104_v59 = vld [vmem:[#allocation5 + $0x1e8] sm:$0xff]  ;;  %v103_v60 = vld [vmem:[#allocation5 + $0x1e0] sm:$0xff]  ;;  %v102_v61 = vld [vmem:[#allocation5 + $0x1d8] sm:$0xff] }
  0x1e   :  { %121 = vmatpush.msra.mxu0 %v49_v16  ;;  %180 = vmatpush.msra.mxu3 %v87_v36  ;;  %v101_v62 = vld [vmem:[#allocation5 + $0x1d0] sm:$0xff]  ;;  %v100_v63 = vld [vmem:[#allocation5 + $0x1c8] sm:$0xff]  ;;  %v99_v0 = vld [vmem:[#allocation5 + $0x1c0] sm:$0xff] }
  0x1f   :  { %143 = vmatpush.msra.mxu1 %v65_v21  ;;  %160 = vmatpush.msra.mxu2 %v86_v37  ;;  %v98_v1 = vld [vmem:[#allocation5 + $0x1b8] sm:$0xff]  ;;  %v97_v2 = vld [vmem:[#allocation5 + $0x1b0] sm:$0xff]  ;;  %v96_v3 = vld [vmem:[#allocation5 + $0x1a8] sm:$0xff] }
  0x20   :  { %122 = vmatpush.msra.mxu0 %v48_v18  ;;  %181 = vmatpush.msra.mxu3 %v86_v37  ;;  %v95_v4 = vld [vmem:[#allocation5 + $0x1a0] sm:$0xff]  ;;  %v94_v5 = vld [vmem:[#allocation5 + $0x198] sm:$0xff]  ;;  %v93_v10 = vld [vmem:[#allocation5 + $0x190] sm:$0xff] }
  0x21   :  { %144 = vmatpush.msra.mxu1 %v64_v23  ;;  %161 = vmatpush.msra.mxu2 %v85_v38  ;;  %v245_v6 = vld [vmem:[#allocation5 + $0x202] ss:$0 sm:$0xff]  ;;  %v92_v11 = vld [vmem:[#allocation5 + $0x188] sm:$0xff]  ;;  %v246_v16 = vld [vmem:[#allocation5 + $0x203] ss:$0 sm:$0xff] }
  0x22   :  { %123 = vmatpush.msra.mxu0 %v47_v20  ;;  %182 = vmatpush.msra.mxu3 %v85_v38  ;;  %v91_v12 = vld [vmem:[#allocation5 + $0x180] sm:$0xff] }
  0x23   :  { %145 = vmatpush.msra.mxu1 %v63_v25  ;;  %162 = vmatpush.msra.mxu2 %v84_v39 }
  0x24   :  { %124 = vmatpush.msra.mxu0 %v46_v22  ;;  %183 = vmatpush.msra.mxu3 %v84_v39 }
  0x25   :  { %146 = vmatpush.msra.mxu1 %v62_v27  ;;  %163 = vmatpush.msra.mxu2 %v83_v40 }
  0x26   :  { %125 = vmatpush.msra.mxu0 %v45_v24  ;;  %184 = vmatpush.msra.mxu3 %v83_v40 }
  0x27   :  { %147 = vmatpush.msra.mxu1 %v61_v30  ;;  %164 = vmatpush.msra.mxu2 %v82_v41 }
  0x28   :  { %126 = vmatpush.msra.mxu0 %v44_v26  ;;  %185 = vmatpush.msra.mxu3 %v82_v41 }
  0x29   :  { %148 = vmatpush.msra.mxu1 %v60_v31  ;;  %165 = vmatpush.msra.mxu2 %v81_v42 }
  0x2a   :  { %127 = vmatpush.msra.mxu0 %v43_v28  ;;  %186 = vmatpush.msra.mxu3 %v81_v42 }
  0x2b   :  { %128 = vmatmul.f32.vlgmr.msra.gmra.mxu0 %v42_v29  ;;  %149 = vmatpush.msra.mxu1 %v59_v32 }
  0x2c   :  { %166 = vmatpush.msra.mxu2 %v80_v43  ;;  %187 = vmatpush.msra.mxu3 %v80_v43 }
  0x2d   :  { %199 = vmatpush.msrb.mxu0 %v106_v57 }
  0x2e   :  { %167 = vmatpush.msra.mxu2 %v79_v44  ;;  %188 = vmatpush.msra.mxu3 %v79_v44 }
  0x2f   :  { %200 = vmatpush.msrb.mxu0 %v105_v58 }
  0x30   :  { %168 = vmatpush.msra.mxu2 %v78_v45  ;;  %189 = vmatpush.msra.mxu3 %v78_v45 }
  0x31   :  { %201 = vmatpush.msrb.mxu0 %v104_v59 }
  0x32   :  { %169 = vmatpush.msra.mxu2 %v77_v50  ;;  %190 = vmatpush.msra.mxu3 %v77_v50 }
  0x33   :  { %202 = vmatpush.msrb.mxu0 %v103_v60 }
  0x34   :  { %170 = vmatpush.msra.mxu2 %v76_v51  ;;  %191 = vmatpush.msra.mxu3 %v76_v51 }
  0x35   :  { %203 = vmatpush.msrb.mxu0 %v102_v61 }
  0x36   :  { %171 = vmatpush.msra.mxu2 %v75_v52  ;;  %192 = vmatpush.msra.mxu3 %v75_v52 }
  0x37   :  { %204 = vmatpush.msrb.mxu0 %v101_v62 }
  0x39   :  { %205 = vmatpush.msrb.mxu0 %v100_v63 }
  0x3b   :  { %206 = vmatpush.msrb.mxu0 %v99_v0 }
  0x3d   :  { %207 = vmatpush.msrb.mxu0 %v98_v1 }
  0x3f   :  { %208 = vmatpush.msrb.mxu0 %v97_v2 }
  0x41   :  { %209 = vmatpush.msrb.mxu0 %v96_v3 }
  0x43   :  { %210 = vmatpush.msrb.mxu0 %v95_v4 }
  0x45   :  { %211 = vmatpush.msrb.mxu0 %v94_v5 }
  0x47   :  { %212 = vmatpush.msrb.mxu0 %v93_v10 }
  0x49   :  { %213 = vmatpush.msrb.mxu0 %v92_v11 }
  0x4b   :  { %214 = vmatpush.msrb.mxu0 %v91_v12 }
  0xa8   :  { %v129_v47 = vpop.f32.mrf.mxu0 }
  0xa9   :  { %v130_v48 = vadd.f32 %v243_v46, %v129_v47 }
  0xab   :  { %v132_v49 = vmax.f32 %v130_v48, 0.0 }
  0xad   :  { %150 = vmatmul.f32.vlgmr.msra.gmra.mxu1 %v132_v49 }
 0x12a   :  { %v151_v54 = vpop.f32.mrf.mxu1 }
 0x12b   :  { %v152_v55 = vadd.f32 %v244_v53, %v151_v54 }
 0x12d   :  { %v154_v56 = vmax.f32 %v152_v55, 0.0 }
 0x12f   :  { %172 = vmatmul.f32.vlgmr.msra.gmra.mxu2 %v154_v56 }
 0x1b2   :  { %v173_v7 = vpop.f32.mrf.mxu2 }
 0x1b3   :  { %v174_v8 = vadd.f32 %v245_v6, %v173_v7 }
 0x1b5   :  { %v176_v9 = vmax.f32 %v174_v8, 0.0 }
 0x1b7   :  { %193 = vmatmul.f32.vlgmr.msra.gmra.mxu3 %v176_v9 }
 0x23a   :  { %v194_v13 = vpop.f32.mrf.mxu3 }
 0x23b   :  { %v195_v14 = vadd.f32 %v245_v6, %v194_v13 }
 0x23d   :  { %v197_v15 = vmax.f32 %v195_v14, 0.0 }
 0x23f   :  { %215 = vmatmul.f32.vlgmr.msrb.gmra.mxu0 %v197_v15 }
 0x2bc   :  { %v216_v17 = vpop.f32.mrf.mxu0 }
 0x2bd   :  { %v217_v18 = vadd.f32 %v246_v16, %v216_v17 }
 0x2bf   :  { %219 = vst [vmem:[#allocation7] sm:$0xff] %v217_v18 }
 0x2c0   :  { %230 = dma.vmem_to_hbm [thread:$0]  %s226_s1, 128, %s228_s23, [#allocation4]  }
 0x2c1   :  { %323 = dma.done.wait [#allocation4], 128  }
 0x2c2   :  { %324 = vsyncadd [#allocation4], 4294967168 }
 0x2c3   :  { %235 = vsyncpa [#allocation3], 1 }
 0x2c4   :  { %236 = vsyncpa [#allocation6], 1 }
 0x2c5   :  { %237 = vsyncpa [#allocation4], 1 }

</bundles_post_ra>
